<compile_context>
chip_gen: v6e
topology: v6e:2x2x1
jax: 0.10.0
libtpu: 0.0.40
codegen_flags: <defaults>
</compile_context>

<pallas_src>
import functools

import numpy as np

import jax
import jax.numpy as jnp
from jax import lax
from jax.experimental import pallas as pl
from jax.experimental.pallas import tpu as pltpu

# --- cfg values (deterministic, standard RetinaNet config) -------------------
FG_IOU_THRESH = 0.5
BG_IOU_THRESH = 0.4
BBOX_NORMALIZE_MEANS = (0.0, 0.0, 0.0, 0.0)
BBOX_NORMALIZE_STDS = (0.1, 0.1, 0.2, 0.2)

_VMEM_LIMIT_BYTES = 48 * 1024 * 1024   # < v7x 64 MiB physical, > all scoped defaults


def _round_up(x, m):
    return (x + m - 1) // m * m


def _iou_tile(img_wh_ref, anchors_ref, gt_ref, *, exact_div):
    """keep mask (1, TA) and IoU matrix (G, TA) for one anchor tile.

    Shared by both passes so the tie rule's `iou == gt_max` comparison sees
    values produced by the identical op sequence.
    """
    ax1 = anchors_ref[0:1, :]          # (1, TA)
    ay1 = anchors_ref[1:2, :]
    ax2 = anchors_ref[2:3, :]
    ay2 = anchors_ref[3:4, :]

    img_w = img_wh_ref[0].astype(jnp.float32)
    img_h = img_wh_ref[1].astype(jnp.float32)
    # allowed_border == 0
    keep = (ax1 >= 0.0) & (ay1 >= 0.0) & (ax2 < img_w) & (ay2 < img_h)  # (1, TA)

    gx1 = gt_ref[0, :, 0:1]            # (G, 1)
    gy1 = gt_ref[0, :, 1:2]
    gx2 = gt_ref[0, :, 2:3]
    gy2 = gt_ref[0, :, 3:4]

    iw = jnp.maximum(jnp.minimum(gx2, ax2) - jnp.maximum(gx1, ax1) + 1.0, 0.0)
    ih = jnp.maximum(jnp.minimum(gy2, ay2) - jnp.maximum(gy1, ay1) + 1.0, 0.0)
    inter = iw * ih
    area_g = (gx2 - gx1 + 1.0) * (gy2 - gy1 + 1.0)
    area_a = (ax2 - ax1 + 1.0) * (ay2 - ay1 + 1.0)
    union = area_g + area_a - inter                      # >= 1 ("+1" convention)
    if exact_div:
        iou = inter / union
    else:
        # EUP approx reciprocal + one Newton step: ~f32-accurate, off the VPU
        # divide path that dominates the (G, TA) loop.
        r = pl.reciprocal(union, approx=True)
        r = r * (2.0 - union * r)
        iou = inter * r
    return keep, iou


# --- pass 1: per-gt max IoU over kept anchors (global over A) ----------------
def _gt_max_kernel(img_wh_ref, anchors_ref, gt_ref, gtmax_ref, *, exact_div):
    keep, iou = _iou_tile(img_wh_ref, anchors_ref, gt_ref, exact_div=exact_div)
    iou_k = jnp.where(keep, iou, -1.0)
    tile_max = jnp.max(iou_k, axis=1, keepdims=True)          # (G, 1)

    @pl.when(pl.program_id(2) == 0)
    def _():
        gtmax_ref[0, 0, :, :] = tile_max                       # init-with-value

    @pl.when(pl.program_id(2) != 0)
    def _():
        gtmax_ref[0, 0, :, :] = jnp.maximum(gtmax_ref[0, 0, :, :], tile_max)


# --- pass 2: assignment + classification / regression targets ----------------
def _assign_encode_kernel(img_wh_ref, num_gt_ref, anchors_ref, gt_ref, gt_t_ref,
                          gtmax_ref, cls_ref, reg_ref, *,
                          fg_thresh, bg_thresh, means, inv_stds, exact_div):
    b = pl.program_id(0)
    G = gt_ref.shape[1]

    keep, iou = _iou_tile(img_wh_ref, anchors_ref, gt_ref, exact_div=exact_div)

    num_gt = num_gt_ref[b]
    gt_row = lax.broadcasted_iota(jnp.int32, (G, 1), 0)
    gt_valid = gt_row < num_gt                                # (G, 1)

    neg_one = jnp.float32(-1.0)
    iou_v = jnp.where(gt_valid, iou, neg_one)                 # mask padded gts

    # per-anchor max / (first) argmax over gts
    max_ov = jnp.max(iou_v, axis=0, keepdims=True)            # (1, TA)
    gidx = lax.broadcasted_iota(jnp.int32, iou.shape, 0)      # (G, TA)
    argmax = jnp.min(jnp.where(iou_v == max_ov, gidx, G), axis=0, keepdims=True)

    # ---- assignment ----------------------------------------------------------
    assign = jnp.full(max_ov.shape, -1, jnp.int32)
    assign = jnp.where((max_ov >= 0.0) & (max_ov < bg_thresh), 0, assign)
    assign = jnp.where(max_ov >= fg_thresh, argmax + 1, assign)
    # "each gt claims the anchors it overlaps most"; later gt index wins ties.
    gt_max = gtmax_ref[0, :, :]                               # (G, 1), global
    tie = (iou_v == gt_max) & (gt_max >= 0.0)                 # padded gts never tie
    tie_assign = jnp.max(jnp.where(tie, gidx + 1, 0), axis=0, keepdims=True)
    assign = jnp.where(tie_assign > 0, tie_assign, assign)

    pos = assign > 0
    neg = assign == 0

    # ---- matched gt box + label via one MXU matmul: (5, G) @ (G, TA) --------
    # HIGHEST precision: exact for f32 coords/labels against a 0/1 one-hot and
    # essentially free at M=5.
    gsel = (gidx == (assign - 1)).astype(jnp.float32)         # one-hot over gts
    matched = jnp.dot(gt_t_ref[0, :, :], gsel,
                      preferred_element_type=jnp.float32,
                      precision=lax.Precision.HIGHEST)        # (5, TA)

    # ---- classification targets ---------------------------------------------
    mlabel = matched[4:5, :]
    cls = jnp.where(pos, mlabel, jnp.where(neg, 0.0, neg_one))
    cls_ref[0, :, :] = jnp.where(keep, cls, neg_one)          # unmap fill = -1

    # ---- regression targets (encodeBboxes, "+1" convention), stacked --------
    axy1 = anchors_ref[0:2, :]                                # (2, TA) [x1;y1]
    axy2 = anchors_ref[2:4, :]                                # (2, TA) [x2;y2]
    awh = axy2 - axy1 + 1.0
    acxy = axy1 + 0.5 * awh
    gxy1 = matched[0:2, :]
    gxy2 = matched[2:4, :]
    gwh = gxy2 - gxy1 + 1.0
    gcxy = gxy1 + 0.5 * gwh

    inv_awh = pl.reciprocal(awh, approx=True)                 # EUP
    inv_awh = inv_awh * (2.0 - awh * inv_awh)                 # Newton: ~exact
    txy = (gcxy - acxy) * inv_awh
    twh = jnp.log(gwh * inv_awh)
    reg = jnp.concatenate([txy, twh], axis=0)                 # (4, TA)

    # (4, 1) per-row constants built from SCALARS only (no captured arrays).
    row = lax.broadcasted_iota(jnp.int32, (4, 1), 0)
    mean_c = jnp.full((4, 1), means[3], jnp.float32)
    istd_c = jnp.full((4, 1), inv_stds[3], jnp.float32)
    for r in range(3):
        mean_c = jnp.where(row == r, means[r], mean_c)
        istd_c = jnp.where(row == r, inv_stds[r], istd_c)

    reg = jnp.where(pos, reg, 0.0)          # non-pos kept anchors keep 0 target
    reg = (reg - mean_c) * istd_c           # normalize everything kept
    reg_ref[0, :, :] = jnp.where(keep, reg, 0.0)   # unmap fill = 0, one store


def build_target_layer(anchors, gt_boxes, img_info, num_gt_boxes,
                       fg_iou_thresh=FG_IOU_THRESH,
                       bg_iou_thresh=BG_IOU_THRESH,
                       means=BBOX_NORMALIZE_MEANS,
                       stds=BBOX_NORMALIZE_STDS,
                       tile_anchors=None,
                       exact_iou_div=False,
                       vmem_limit_bytes=_VMEM_LIMIT_BYTES):
    anchors = jnp.asarray(anchors, jnp.float32)
    gt_boxes = jnp.asarray(gt_boxes, jnp.float32)
    img_info = jnp.asarray(img_info, jnp.float32)

    A = anchors.shape[0]
    B, G, _ = gt_boxes.shape

    # lane-dense layouts: anchor axis -> lanes
    anchors_t = anchors.T                                    # (4, A)
    gt_t = jnp.transpose(gt_boxes, (0, 2, 1))                # (B, 5, G) for MXU

    # Anchor-axis tile: as large as the VMEM budget allows (~10 live (G,TA)
    # f32 temps + double-buffered I/O inside the 48 MiB scoped limit), capped
    # at 8192 lanes to amortize the ~0.35 us per-grid-step overhead.
    g_pad = _round_up(G, 8)
    if tile_anchors is None:
        budget = 40 * 1024 * 1024
        ta = budget // (10 * 4 * g_pad)
        ta = min(8192, ta)
    else:
        ta = int(tile_anchors)
    ta = min(max(ta, 128), _round_up(A, 128))
    ta = _round_up(ta, 128)

    # Leading size-2 "parallel" split on pass 1 so both v7x TensorCores get
    # anchor work even when B == 1.
    n_tiles0 = _round_up(A, ta) // ta
    nsplit = 2 if n_tiles0 >= 2 else 1
    a_pad = _round_up(A, nsplit * ta)
    if a_pad != A:
        # Pad columns are all -1 so they fail the keep test and land on the
        # unmap fill values; they are sliced off afterwards.
        anchors_t = jnp.pad(anchors_t, ((0, 0), (0, a_pad - A)),
                            constant_values=-1.0)
    n_tiles = a_pad // ta
    tiles_per_split = n_tiles // nsplit

    # torch uses img_info[0] for every batch element; int() truncates
    img_wh = jnp.stack([img_info[0, 1], img_info[0, 0]]).astype(jnp.int32)
    num_gt = jnp.asarray(num_gt_boxes).astype(jnp.int32)

    # ---- pass 1: per-gt max IoU over all kept anchors ------------------------
    gt_max_partial = pl.pallas_call(
        functools.partial(_gt_max_kernel, exact_div=bool(exact_iou_div)),
        out_shape=jax.ShapeDtypeStruct((nsplit, B, G, 1), jnp.float32),
        grid_spec=pltpu.PrefetchScalarGridSpec(
            num_scalar_prefetch=1,                  # img_wh -> SMEM
            grid=(nsplit, B, tiles_per_split),
            in_specs=[
                pl.BlockSpec((4, ta),
                             lambda s, b, a, *_: (0, s * tiles_per_split + a)),
                pl.BlockSpec((1, G, 5), lambda s, b, a, *_: (b, 0, 0)),
            ],
            out_specs=pl.BlockSpec((1, 1, G, 1), lambda s, b, a, *_: (s, b, 0, 0)),
        ),
        compiler_params=pltpu.CompilerParams(
            dimension_semantics=("parallel", "parallel", "arbitrary"),
            vmem_limit_bytes=int(vmem_limit_bytes)),
        cost_estimate=pl.CostEstimate(
            flops=int(14 * B * G * a_pad),
            transcendentals=int(B * G * a_pad),
            bytes_accessed=int(4 * (nsplit * B * 4 * a_pad
                                    + nsplit * B * G * 5 + nsplit * B * G))),
    )(img_wh, anchors_t, gt_boxes)

    gt_max = jnp.max(gt_max_partial, axis=0)                  # (B, G, 1)

    # ---- pass 2: assignment + target encode ----------------------------------
    kernel = functools.partial(
        _assign_encode_kernel,
        fg_thresh=float(fg_iou_thresh),
        bg_thresh=float(bg_iou_thresh),
        means=tuple(float(m) for m in means),
        inv_stds=tuple(1.0 / float(s) for s in stds),
        exact_div=bool(exact_iou_div),
    )

    cls, reg = pl.pallas_call(
        kernel,
        out_shape=(jax.ShapeDtypeStruct((B, 1, a_pad), jnp.float32),
                   jax.ShapeDtypeStruct((B, 4, a_pad), jnp.float32)),
        grid_spec=pltpu.PrefetchScalarGridSpec(
            num_scalar_prefetch=2,                  # img_wh, num_gt -> SMEM
            grid=(B, n_tiles),
            in_specs=[
                pl.BlockSpec((4, ta), lambda b, a, *_: (0, a)),      # anchors^T
                pl.BlockSpec((1, G, 5), lambda b, a, *_: (b, 0, 0)), # gt (G,5)
                pl.BlockSpec((1, 5, G), lambda b, a, *_: (b, 0, 0)), # gt^T (5,G)
                pl.BlockSpec((1, G, 1), lambda b, a, *_: (b, 0, 0)), # gt_max
            ],
            out_specs=[
                pl.BlockSpec((1, 1, ta), lambda b, a, *_: (b, 0, a)),  # cls
                pl.BlockSpec((1, 4, ta), lambda b, a, *_: (b, 0, a)),  # reg
            ],
        ),
        compiler_params=pltpu.CompilerParams(
            dimension_semantics=("parallel", "parallel"),
            vmem_limit_bytes=int(vmem_limit_bytes)),
        cost_estimate=pl.CostEstimate(
            flops=int(B * a_pad * (35 * G + 60)),
            transcendentals=int(B * a_pad * (G + 4)),
            bytes_accessed=int(4 * (B * 4 * a_pad + B * G * 11
                                    + B * 5 * a_pad))),
    )(img_wh, num_gt, anchors_t, gt_boxes, gt_t, gt_max)

    # NOTE: a downstream smooth-L1 loss could consume `reg` directly as the
    # lane-dense (B, 4, A) slab and skip this HBM-bound relayout; it is kept
    # only for PyTorch (B, A, 4) layout parity.
    cls_targets = cls[:, 0, :A]                               # (B, total_anchors)
    reg_targets = jnp.transpose(reg[:, :, :A], (0, 2, 1))     # (B, total_anchors, 4)
    return [cls_targets, reg_targets]


# --- pure-numpy reference (mirrors the torch forward) -------------------------
def _reference_numpy(anchors, gt_boxes, img_info, num_gt, fg, bg, means, stds):
    anchors = np.asarray(anchors, np.float32)
    gt = np.asarray(gt_boxes, np.float32)
    B, A = gt.shape[0], anchors.shape[0]
    w, h = int(img_info[0][1]), int(img_info[0][0])
    keep = ((anchors[:, 0] >= 0) & (anchors[:, 1] >= 0)
            & (anchors[:, 2] < w) & (anchors[:, 3] < h))
    kidx = np.nonzero(keep)[0]
    ank = anchors[kidx]
    K = kidx.size
    cls = np.full((B, K), -1.0, np.float32)
    reg = np.zeros((B, K, 4), np.float32)
    for b in range(B):
        n = int(num_gt[b])
        g = gt[b, :n]
        gx1, gy1, gx2, gy2 = g[:, 0:1], g[:, 1:2], g[:, 2:3], g[:, 3:4]
        ax1, ay1, ax2, ay2 = ank[:, 0], ank[:, 1], ank[:, 2], ank[:, 3]
        iw = np.maximum(np.minimum(gx2, ax2) - np.maximum(gx1, ax1) + 1, 0)
        ih = np.maximum(np.minimum(gy2, ay2) - np.maximum(gy1, ay1) + 1, 0)
        inter = iw * ih
        area_g = (gx2 - gx1 + 1) * (gy2 - gy1 + 1)
        area_a = (ax2 - ax1 + 1) * (ay2 - ay1 + 1)
        ov = inter / (area_g + area_a - inter)
        maxo, argo = ov.max(axis=0), ov.argmax(axis=0)
        gt_maxo = ov.max(axis=1)
        assign = np.full((K,), -1, np.int64)
        assign[(maxo >= 0) & (maxo < bg)] = 0
        posm = maxo >= fg
        assign[posm] = argo[posm] + 1
        for i in range(n):
            if gt_maxo[i] >= 0:
                assign[ov[i, :] == gt_maxo[i]] = i + 1
        posm, negm = assign > 0, assign == 0
        cls[b][posm] = g[:, 4][assign[posm] - 1]
        cls[b][negm] = 0.0
        pa, pg = ank[posm], g[:, :4][assign[posm] - 1]
        aw, ah = pa[:, 2] - pa[:, 0] + 1, pa[:, 3] - pa[:, 1] + 1
        acx, acy = pa[:, 0] + 0.5 * aw, pa[:, 1] + 0.5 * ah
        gw, gh = pg[:, 2] - pg[:, 0] + 1, pg[:, 3] - pg[:, 1] + 1
        gcx, gcy = pg[:, 0] + 0.5 * gw, pg[:, 1] + 0.5 * gh
        reg[b][posm] = np.stack([(gcx - acx) / aw, (gcy - acy) / ah,
                                 np.log(gw / aw), np.log(gh / ah)], axis=1)
    reg = (reg - np.asarray(means, np.float32)) / np.asarray(stds, np.float32)
    cls_full = np.full((B, A), -1.0, np.float32)
    reg_full = np.zeros((B, A, 4), np.float32)
    cls_full[:, kidx] = cls
    reg_full[:, kidx, :] = reg
    return cls_full, reg_full


if __name__ == "__main__":
    key = jax.random.PRNGKey(0)
    B, A, G = 2, 250, 8          # A=250 exercises the anchor-pad path
    img_h, img_w = 64.0, 64.0

    k1, k2, k3, k4 = jax.random.split(key, 4)

    # anchors (A, 4) as x1,y1,x2,y2; some fall outside the image so the
    # keep/unmap path is exercised.
    ctr = jax.random.uniform(k1, (A, 2), minval=-8.0, maxval=72.0)
    wh = jax.random.uniform(k2, (A, 2), minval=8.0, maxval=32.0)
    anchors = jnp.concatenate([ctr - 0.5 * wh, ctr + 0.5 * wh], axis=1)

    # gt boxes (B, G, 5) = x1,y1,x2,y2,label ; padded rows masked by num_gt
    g_xy1 = jax.random.uniform(k3, (B, G, 2), minval=0.0, maxval=40.0)
    g_wh = jax.random.uniform(k4, (B, G, 2), minval=8.0, maxval=24.0)
    g_label = jnp.broadcast_to(
        jnp.arange(1, G + 1, dtype=jnp.float32)[None, :, None], (B, G, 1))
    gt_boxes = jnp.concatenate(
        [g_xy1, jnp.minimum(g_xy1 + g_wh, img_w - 1.0), g_label], axis=-1)

    img_info = jnp.array([[img_h, img_w, 1.0]] * B, jnp.float32)   # (h, w, scale)
    num_gt_boxes = jnp.array([3.0, 5.0], jnp.float32)

    # default (auto) tile
    cls_t, reg_t = build_target_layer(anchors, gt_boxes, img_info, num_gt_boxes)
    jax.block_until_ready((cls_t, reg_t))

    # tiny tile -> multi-grid-step + pass-1 split path; must match the big tile
    cls_s, reg_s = build_target_layer(anchors, gt_boxes, img_info, num_gt_boxes,
                                      tile_anchors=128)
    jax.block_until_ready((cls_s, reg_s))

    assert cls_t.shape == (B, A) and cls_t.dtype == jnp.float32
    assert reg_t.shape == (B, A, 4) and reg_t.dtype == jnp.float32
    assert bool(jnp.all(jnp.isfinite(reg_t)))
    assert np.allclose(np.asarray(cls_t), np.asarray(cls_s), atol=1e-5)
    assert np.allclose(np.asarray(reg_t), np.asarray(reg_s), atol=1e-5)

    # numerical check against the torch-semantics numpy reference
    cls_ref, reg_ref = _reference_numpy(
        np.asarray(anchors), np.asarray(gt_boxes), np.asarray(img_info),
        np.asarray(num_gt_boxes), FG_IOU_THRESH, BG_IOU_THRESH,
        BBOX_NORMALIZE_MEANS, BBOX_NORMALIZE_STDS)
    assert np.allclose(np.asarray(cls_t), cls_ref, atol=1e-4)
    assert np.allclose(np.asarray(reg_t), reg_ref, rtol=1e-3, atol=1e-3)

    print("KERNEL_OK")
</pallas_src>

<mosaic_0001>
module attributes {stable_mosaic.version = 11 : i64} {
  func.func @_gt_max_kernel(%arg0: i32, %arg1: i32, %arg2: i32, %arg3: memref<2xi32, #tpu.memory_space<smem>>, %arg4: memref<4x256xf32, #tpu.memory_space<vmem>>, %arg5: memref<1x8x5xf32, #tpu.memory_space<vmem>>, %arg6: memref<1x1x8x1xf32, #tpu.memory_space<vmem>>) attributes {dimension_semantics = [#tpu.dimension_semantics<parallel>, #tpu.dimension_semantics<parallel>, #tpu.dimension_semantics<arbitrary>], iteration_bounds = array<i64: 1, 2, 1>, scalar_prefetch = 1 : i64, scratch_operands = 0 : i64, tpu.core_type = #tpu.core_type<tc>, window_params = [{transform_indices = @transform_0, window_bounds = array<i64: 4, 256>}, {transform_indices = @transform_1, window_bounds = array<i64: 1, 8, 5>}, {transform_indices = @transform_2, window_bounds = array<i64: 1, 1, 8, 1>}]} {
    %c0 = arith.constant 0 : index
    %c0_0 = arith.constant 0 : index
    %0 = vector.load %arg4[%c0, %c0_0] : memref<4x256xf32, #tpu.memory_space<vmem>>, vector<1x256xf32>
    %c1 = arith.constant 1 : index
    %c0_1 = arith.constant 0 : index
    %1 = vector.load %arg4[%c1, %c0_1] : memref<4x256xf32, #tpu.memory_space<vmem>>, vector<1x256xf32>
    %c2 = arith.constant 2 : index
    %c0_2 = arith.constant 0 : index
    %2 = vector.load %arg4[%c2, %c0_2] : memref<4x256xf32, #tpu.memory_space<vmem>>, vector<1x256xf32>
    %c3 = arith.constant 3 : index
    %c0_3 = arith.constant 0 : index
    %3 = vector.load %arg4[%c3, %c0_3] : memref<4x256xf32, #tpu.memory_space<vmem>>, vector<1x256xf32>
    %c0_4 = arith.constant 0 : index
    %4 = memref.load %arg3[%c0_4] : memref<2xi32, #tpu.memory_space<smem>>
    %5 = arith.sitofp %4 : i32 to f32
    %c1_5 = arith.constant 1 : index
    %6 = memref.load %arg3[%c1_5] : memref<2xi32, #tpu.memory_space<smem>>
    %7 = arith.sitofp %6 : i32 to f32
    %cst = arith.constant 0.000000e+00 : f32
    %8 = vector.broadcast %cst : f32 to vector<1x256xf32>
    %9 = arith.cmpf oge, %0, %8 : vector<1x256xf32>
    %cst_6 = arith.constant 0.000000e+00 : f32
    %10 = vector.broadcast %cst_6 : f32 to vector<1x256xf32>
    %11 = arith.cmpf oge, %1, %10 : vector<1x256xf32>
    %12 = arith.andi %9, %11 : vector<1x256xi1>
    %13 = vector.broadcast %5 : f32 to vector<1x256xf32>
    %14 = arith.cmpf olt, %2, %13 : vector<1x256xf32>
    %15 = arith.andi %12, %14 : vector<1x256xi1>
    %16 = vector.broadcast %7 : f32 to vector<1x256xf32>
    %17 = arith.cmpf olt, %3, %16 : vector<1x256xf32>
    %18 = arith.andi %15, %17 : vector<1x256xi1>
    %c0_7 = arith.constant 0 : index
    %c0_8 = arith.constant 0 : index
    %c0_9 = arith.constant 0 : index
    %19 = vector.load %arg5[%c0_7, %c0_8, %c0_9] : memref<1x8x5xf32, #tpu.memory_space<vmem>>, vector<1x8x1xf32>
    %20 = vector.shape_cast %19 : vector<1x8x1xf32> to vector<8x1xf32>
    %c0_10 = arith.constant 0 : index
    %c0_11 = arith.constant 0 : index
    %c1_12 = arith.constant 1 : index
    %21 = vector.load %arg5[%c0_10, %c0_11, %c1_12] : memref<1x8x5xf32, #tpu.memory_space<vmem>>, vector<1x8x1xf32>
    %22 = vector.shape_cast %21 : vector<1x8x1xf32> to vector<8x1xf32>
    %c0_13 = arith.constant 0 : index
    %c0_14 = arith.constant 0 : index
    %c2_15 = arith.constant 2 : index
    %23 = vector.load %arg5[%c0_13, %c0_14, %c2_15] : memref<1x8x5xf32, #tpu.memory_space<vmem>>, vector<1x8x1xf32>
    %24 = vector.shape_cast %23 : vector<1x8x1xf32> to vector<8x1xf32>
    %c0_16 = arith.constant 0 : index
    %c0_17 = arith.constant 0 : index
    %c3_18 = arith.constant 3 : index
    %25 = vector.load %arg5[%c0_16, %c0_17, %c3_18] : memref<1x8x5xf32, #tpu.memory_space<vmem>>, vector<1x8x1xf32>
    %26 = vector.shape_cast %25 : vector<1x8x1xf32> to vector<8x1xf32>
    %27 = vector.broadcast %24 : vector<8x1xf32> to vector<8x256xf32>
    %28 = vector.broadcast %2 : vector<1x256xf32> to vector<8x256xf32>
    %29 = arith.minimumf %27, %28 : vector<8x256xf32>
    %30 = vector.broadcast %20 : vector<8x1xf32> to vector<8x256xf32>
    %31 = vector.broadcast %0 : vector<1x256xf32> to vector<8x256xf32>
    %32 = arith.maximumf %30, %31 : vector<8x256xf32>
    %33 = arith.subf %29, %32 : vector<8x256xf32>
    %cst_19 = arith.constant 1.000000e+00 : f32
    %34 = vector.broadcast %cst_19 : f32 to vector<8x256xf32>
    %35 = arith.addf %33, %34 : vector<8x256xf32>
    %cst_20 = arith.constant 0.000000e+00 : f32
    %36 = vector.broadcast %cst_20 : f32 to vector<8x256xf32>
    %37 = arith.maximumf %35, %36 : vector<8x256xf32>
    %38 = vector.broadcast %26 : vector<8x1xf32> to vector<8x256xf32>
    %39 = vector.broadcast %3 : vector<1x256xf32> to vector<8x256xf32>
    %40 = arith.minimumf %38, %39 : vector<8x256xf32>
    %41 = vector.broadcast %22 : vector<8x1xf32> to vector<8x256xf32>
    %42 = vector.broadcast %1 : vector<1x256xf32> to vector<8x256xf32>
    %43 = arith.maximumf %41, %42 : vector<8x256xf32>
    %44 = arith.subf %40, %43 : vector<8x256xf32>
    %cst_21 = arith.constant 1.000000e+00 : f32
    %45 = vector.broadcast %cst_21 : f32 to vector<8x256xf32>
    %46 = arith.addf %44, %45 : vector<8x256xf32>
    %cst_22 = arith.constant 0.000000e+00 : f32
    %47 = vector.broadcast %cst_22 : f32 to vector<8x256xf32>
    %48 = arith.maximumf %46, %47 : vector<8x256xf32>
    %49 = arith.mulf %37, %48 : vector<8x256xf32>
    %50 = arith.subf %24, %20 : vector<8x1xf32>
    %cst_23 = arith.constant 1.000000e+00 : f32
    %51 = vector.broadcast %cst_23 : f32 to vector<8x1xf32>
    %52 = arith.addf %50, %51 : vector<8x1xf32>
    %53 = arith.subf %26, %22 : vector<8x1xf32>
    %cst_24 = arith.constant 1.000000e+00 : f32
    %54 = vector.broadcast %cst_24 : f32 to vector<8x1xf32>
    %55 = arith.addf %53, %54 : vector<8x1xf32>
    %56 = arith.mulf %52, %55 : vector<8x1xf32>
    %57 = arith.subf %2, %0 : vector<1x256xf32>
    %cst_25 = arith.constant 1.000000e+00 : f32
    %58 = vector.broadcast %cst_25 : f32 to vector<1x256xf32>
    %59 = arith.addf %57, %58 : vector<1x256xf32>
    %60 = arith.subf %3, %1 : vector<1x256xf32>
    %cst_26 = arith.constant 1.000000e+00 : f32
    %61 = vector.broadcast %cst_26 : f32 to vector<1x256xf32>
    %62 = arith.addf %60, %61 : vector<1x256xf32>
    %63 = arith.mulf %59, %62 : vector<1x256xf32>
    %64 = vector.broadcast %56 : vector<8x1xf32> to vector<8x256xf32>
    %65 = vector.broadcast %63 : vector<1x256xf32> to vector<8x256xf32>
    %66 = arith.addf %64, %65 : vector<8x256xf32>
    %67 = arith.subf %66, %49 : vector<8x256xf32>
    %68 = tpu.reciprocal %67 {approx = true} : vector<8x256xf32> -> vector<8x256xf32>
    %69 = arith.mulf %67, %68 : vector<8x256xf32>
    %cst_27 = arith.constant 2.000000e+00 : f32
    %70 = vector.broadcast %cst_27 : f32 to vector<8x256xf32>
    %71 = arith.subf %70, %69 : vector<8x256xf32>
    %72 = arith.mulf %68, %71 : vector<8x256xf32>
    %73 = arith.mulf %49, %72 : vector<8x256xf32>
    %cst_28 = arith.constant -1.000000e+00 : f32
    %74 = vector.shape_cast %18 : vector<1x256xi1> to vector<1x256xi1>
    %75 = vector.broadcast %74 : vector<1x256xi1> to vector<8x256xi1>
    %76 = vector.broadcast %cst_28 : f32 to vector<8x256xf32>
    %77 = arith.select %75, %73, %76 : vector<8x256xi1>, vector<8x256xf32>
    %cst_29 = arith.constant dense<0xFF800000> : vector<8xf32>
    %78 = vector.multi_reduction <maximumf>, %77, %cst_29 [1] : vector<8x256xf32> to vector<8xf32>
    %79 = vector.shape_cast %78 : vector<8xf32> to vector<8x1xf32>
    %c0_i32 = arith.constant 0 : i32
    %80 = arith.cmpi eq, %arg2, %c0_i32 : i32
    %81 = arith.extui %80 : i1 to i32
    %c0_i32_30 = arith.constant 0 : i32
    %82 = arith.cmpi ne, %81, %c0_i32_30 : i32
    scf.if %82 {
      %c0_33 = arith.constant 0 : index
      %c0_34 = arith.constant 0 : index
      %c0_35 = arith.constant 0 : index
      %c0_36 = arith.constant 0 : index
      %86 = vector.load %arg6[%c0_33, %c0_34, %c0_35, %c0_36] : memref<1x1x8x1xf32, #tpu.memory_space<vmem>>, vector<1x1x8x1xf32>
      %87 = vector.shape_cast %86 : vector<1x1x8x1xf32> to vector<8x1xf32>
      %88 = vector.shape_cast %79 : vector<8x1xf32> to vector<1x1x8x1xf32>
      tpu.vector_store %arg6[%c0_33, %c0_34, %c0_35, %c0_36], %88 {strides = array<i32>} : memref<1x1x8x1xf32, #tpu.memory_space<vmem>>, vector<1x1x8x1xf32>,
    } else {
    }
    %c0_i32_31 = arith.constant 0 : i32
    %83 = arith.cmpi ne, %arg2, %c0_i32_31 : i32
    %84 = arith.extui %83 : i1 to i32
    %c0_i32_32 = arith.constant 0 : i32
    %85 = arith.cmpi ne, %84, %c0_i32_32 : i32
    scf.if %85 {
      %c0_33 = arith.constant 0 : index
      %c0_34 = arith.constant 0 : index
      %c0_35 = arith.constant 0 : index
      %c0_36 = arith.constant 0 : index
      %86 = vector.load %arg6[%c0_33, %c0_34, %c0_35, %c0_36] : memref<1x1x8x1xf32, #tpu.memory_space<vmem>>, vector<1x1x8x1xf32>
      %87 = vector.shape_cast %86 : vector<1x1x8x1xf32> to vector<8x1xf32>
      %88 = arith.maximumf %87, %79 : vector<8x1xf32>
      %c0_37 = arith.constant 0 : index
      %c0_38 = arith.constant 0 : index
      %c0_39 = arith.constant 0 : index
      %c0_40 = arith.constant 0 : index
      %89 = vector.load %arg6[%c0_37, %c0_38, %c0_39, %c0_40] : memref<1x1x8x1xf32, #tpu.memory_space<vmem>>, vector<1x1x8x1xf32>
      %90 = vector.shape_cast %89 : vector<1x1x8x1xf32> to vector<8x1xf32>
      %91 = vector.shape_cast %88 : vector<8x1xf32> to vector<1x1x8x1xf32>
      tpu.vector_store %arg6[%c0_37, %c0_38, %c0_39, %c0_40], %91 {strides = array<i32>} : memref<1x1x8x1xf32, #tpu.memory_space<vmem>>, vector<1x1x8x1xf32>,
    } else {
    }
    return
  }
  func.func @transform_0(%arg0: i32, %arg1: i32, %arg2: i32, %arg3: memref<2xi32, #tpu.memory_space<smem>>) -> (i32, i32) {
    %c1_i32 = arith.constant 1 : i32
    %0 = arith.muli %arg0, %c1_i32 : i32
    %1 = arith.addi %0, %arg2 : i32
    %c0_i32 = arith.constant 0 : i32
    %c0_i32_0 = arith.constant 0 : i32
    return %c0_i32, %1 : i32, i32
  }
  func.func @transform_1(%arg0: i32, %arg1: i32, %arg2: i32, %arg3: memref<2xi32, #tpu.memory_space<smem>>) -> (i32, i32, i32) {
    %c0_i32 = arith.constant 0 : i32
    %c0_i32_0 = arith.constant 0 : i32
    %c0_i32_1 = arith.constant 0 : i32
    return %arg1, %c0_i32, %c0_i32_0 : i32, i32, i32
  }
  func.func @transform_2(%arg0: i32, %arg1: i32, %arg2: i32, %arg3: memref<2xi32, #tpu.memory_space<smem>>) -> (i32, i32, i32, i32) {
    %c0_i32 = arith.constant 0 : i32
    %c0_i32_0 = arith.constant 0 : i32
    %c0_i32_1 = arith.constant 0 : i32
    return %arg0, %arg1, %c0_i32, %c0_i32_0 : i32, i32, i32, i32
  }
}

</mosaic_0001>

<bundles_post_ra>
// kernel: tpu_custom_call.1
= control target key start
LH: loop header
LB: loop body
LE: loop exit
PB: predicated region body
PF: predicated region fallthrough
CT: control target
= control target key end

     0   :  { %s672_s0 = inlined_call_operand.vmem [shape: s32[2], index: 0, kind: input, shape index: {}]   ;;  %s673_s1 = inlined_call_operand.vmem [shape: f32[4,256], index: 1, kind: input, shape index: {}]   ;;  %s674_s2 = inlined_call_operand.vmem [shape: f32[2,8,5], index: 2, kind: input, shape index: {}]   ;;  %s675_s3 = inlined_call_operand.vmem [shape: f32[1,2,8,1], index: 3, kind: output, shape index: {}]  }
   0x1   :  { %s8_s14 = sshll.u32 %s672_s0, 4  ;;  %s9_s14 = int_to_ptr.vmem [resolvable:$true] %s8_s14 }
   0x2   :  { %s534_s15 = scalar_lea.vmem %s9_s14, 16  ;;  %p539_p1 = scmp.lt.s32.totalorder %s9_s14, %s9_s14 }
   0x3   :  { %p535_p0 = scmp.ne.s32.totalorder %s9_s14, %s534_s15  ;;  %p540_p2 = scmp.lt.s32.totalorder %s534_s15, %s534_s15 }
   0x5   :  { %p541_p3 = por %p540_p2, %p539_p1 }
   0x7   :  { %p542_p4 = pnand %p541_p3, %p535_p0 }
   0x9   :  { %545 = shalt.err (!%p542_p4)  }
   0xa   :  { %s572_s16 = smov [#allocation3]  }
   0xb   :  { %11 = dma.vmem_to_smem %s9_s14, 16, %s572_s16, [#allocation2] }
   0xc   :  { %558 = dma.done.wait [#allocation2], 16 }
   0xd   :  { %559 = vsyncadd [#allocation2], 4294967280 }
   0xe   :  { %13 = sfence }
   0xf   :  { %s602_s17 = smov 0   ;;  %s604_s18 = smov 0  }
  0x10   :  { %s606_s19 = smov 0  }
  0x11 LB: > { %s34_s0 = sadd.s32 1, %s566_s18  ;;  %p484_p5 = scmp.ge.s32.totalorder %s570_s19, 1  ;;  %s570_s19 = sphi %s606_s19, %s19_s19   ;;  %s566_s18 = sphi %s604_s18, %s677_s18   ;;  %s562_s17 = sphi %s602_s17, %s676_s17  }
  0x12   : > { %p36_p6 = scmp.ge.s32.totalorder %s34_s0, 2  ;;  %p154_p7 = scmp.lt.s32.totalorder %s570_s19, 3 }
  0x14   : > { %s679_s0 = smov (%p36_p6, %s34_s0), 0  ;;  %p155_p8 = pnand %p484_p5, %p154_p7 }
  0x15   : > { %p192_p9 = scmp.lt.s32.totalorder (!%p155_p8), %s562_s17, 1  ;;  %s575_s24 = smov (!%p155_p8), 2  }
  0x16   : > { %158 = sbr.rel (%p155_p8) target bundleno = 560 (0x230), region = 28  ;;  %s578_s25 = smov (!%p155_p8), 127  }
  0x17   : > { %s211_s7 = sld [smem:[#allocation3]] (!%p155_p8) }
  0x18   : > { %s490_s8 = sld [smem:[#allocation3 + $0x1]] (!%p155_p8) }
  0x1b   : > { %v573_v0 = vmov 2   ;;  %s681_s17 = smov (!%p192_p9, %s562_s17), 1  ;;  %v574_v1 = vmov 3   ;;  %v576_v3 = vmov 0   ;;  %v577_v4 = vmov 1  }
  0x1c   : > { %524 = vset.pattern.permute.xlu1 %v573_v0  ;;  %s485_s20 = sshll.u32 %s681_s17, 3  ;;  %526 = vset.pattern.permute.xlu0 %v574_v1  ;;  %v231_v10 = vlaneseq  ;;  %v488_v15 = vld [vmem:[%s673_s1 + $0x2] ss:$4 sm:$0x3]  ;;  %vm373_vm9 = vcmask 7168  }
  0x1d   : > { %s195_s23 = scalar_lea.vmem %s674_s2, %s485_s20  ;;  %v204_v17 = vld [vmem:[%s673_s1] ss:$4 sm:$0x3]  ;;  %v487_v18 = vld [vmem:[%s673_s1 + $0x1] ss:$4 sm:$0x3]  ;;  %s212_s9 = scvt.s32.f32 %s211_s7 }
  0x1e   : > { %v224_v2 = vld [vmem:[%s195_s23] sm:$0xff]  ;;  %v232_v12 = vshrl.u32 %v231_v10, 7  ;;  %v318_v34 = vsub.f32 %v488_v15, %v204_v17  ;;  %s214_s10 = scvt.s32.f32 %s490_s8  ;;  %vm215_vm0 = vcmp.ge.f32.partialorder %v204_v17, 0.0  ;;  %vm216_vm1 = vcmp.ge.f32.partialorder %v487_v18, 0.0  ;;  %s203_s13 = scalar_lea.vmem %s675_s3, %s485_s20 }
  0x1f   : > { %308 = vrot.lane.b32.xlu0 %v224_v2, %s575_s24  ;;  %227 = vperm.xlu1 %524, %v224_v2   ;;  %v489_v19 = vld [vmem:[%s673_s1 + $0x3] ss:$4 sm:$0x3]  ;;  %vm217_vm2 = vmand %vm215_vm0, %vm216_vm1 }
  0x20   : > { %v629_v13 = vsub.s32 0, %v232_v12  ;;  %v631_v14 = vsub.s32 1, %v232_v12  ;;  %v320_v35 = vsub.f32 %v489_v19, %v487_v18  ;;  %v319_v40 = vadd.f32 1.0, %v318_v34 }
  0x21   : > { %v221_v1 = vstv %s214_s10 }
  0x22   : > { %v234_v20 = vrot.slane %v488_v15, %v629_v13  ;;  %v238_v21 = vrot.slane %v488_v15, %v631_v14  ;;  %v251_v22 = vrot.slane %v204_v17, %v629_v13  ;;  %v255_v23 = vrot.slane %v204_v17, %v631_v14 }
  0x23   : > { %525 = vset.pattern.permute.xlu1 %v576_v3  ;;  %v291_v24 = vrot.slane %v487_v18, %v629_v13  ;;  %v295_v25 = vrot.slane %v487_v18, %v631_v14  ;;  %v274_v26 = vrot.slane %v489_v19, %v629_v13  ;;  %v278_v27 = vrot.slane %v489_v19, %v631_v14 }
  0x24   : > { %244 = vperm.xlu1 %525, %v224_v2   ;;  %v321_v41 = vadd.f32 1.0, %v320_v35  ;;  %vm222_vm5 = vcmp.lt.f32.partialorder %v489_v19, %v221_v1 }
  0x26   : > { %v322_v46 = vmul.f32 %v321_v41, %v319_v40 }
  0x28   : > { %527 = vset.pattern.permute.xlu1 %v577_v4  ;;  %v332_v51 = vrot.slane %v322_v46, %v629_v13  ;;  %v336_v52 = vrot.slane %v322_v46, %v631_v14 }
  0x29   : > { %284 = vperm.xlu1 %527, %v224_v2  }
  0x2d   : > { %528 = vset.pattern.permute.xlu1 %v573_v0 }
  0x91   : > { %v309_v5 = vpop.permute.xlu0 %308 }
  0x92   : > { %v311_v6 = vsub.f32 %v224_v2, %v309_v5 }
  0x94   : > { %v312_v7 = vadd.f32 1.0, %v311_v6 }
  0x96   : > { %314 = vrot.lane.b32.xlu0 %v312_v7, %s578_s25 }
  0x9a   : > { %267 = vperm.xlu0 %526, %v224_v2   ;;  %v228_v11 = vpop.permute.xlu1 %227 }
  0x9b   : > { %v241_v30 = vmin.f32 %v228_v11, %v234_v20  ;;  %v242_v31 = vmin.f32 %v228_v11, %v238_v21 }
  0x9e   : > { %529 = vset.pattern.permute.xlu0 %v573_v0  ;;  %v218_v0 = vstv %s212_s9 }
  0x9f   : > { %v245_v16 = vpop.permute.xlu1 %244  ;;  %vm219_vm3 = vcmp.lt.f32.partialorder %v488_v15, %v218_v0 }
  0xa0   : > { %v258_v32 = vmax.f32 %v245_v16, %v251_v22  ;;  %v259_v33 = vmax.f32 %v245_v16, %v255_v23  ;;  %vm220_vm4 = vmand %vm217_vm2, %vm219_vm3 }
  0xa1   : > { %vm223_vm6 = vmand %vm220_vm4, %vm222_vm5 }
  0xa2   : > { %v260_v42 = vsub.f32 %v241_v30, %v258_v32  ;;  %v261_v43 = vsub.f32 %v242_v31, %v259_v33  ;;  %v353_v2 = vsel %vm223_vm6, 1, %v576_v3 }
  0xa4   : > { %v285_v28 = vpop.permute.xlu1 %284  ;;  %v262_v47 = vadd.f32 1.0, %v260_v42  ;;  %v263_v48 = vadd.f32 1.0, %v261_v43 }
  0xa5   : > { %v298_v36 = vmax.f32 %v285_v28, %v291_v24  ;;  %v299_v37 = vmax.f32 %v285_v28, %v295_v25 }
  0xa6   : > { %v264_v53 = vmax.f32 %v262_v47, 0.0  ;;  %v265_v54 = vmax.f32 %v263_v48, 0.0 }
 0x108   : > { %v315_v8 = vpop.permute.xlu0 %314 }
 0x109   : > { %v317_v9 = vmul.f32 %v315_v8, %v312_v7  ;;  %v357_v7 = vrot.slane %v353_v2, %v629_v13 }
 0x10b   : > { %325 = vperm.xlu1 %528, %v317_v9   ;;  %v361_v9 = vrot.slane %v353_v2, %v631_v14  ;;  %vm362_vm7 = vcmp.eq.s32.totalorder %v357_v7, 1 }
 0x10d   : > { %vm363_vm8 = vcmp.eq.s32.totalorder %v361_v9, 1 }
 0x115   : > { %v268_v29 = vpop.permute.xlu0 %267 }
 0x116   : > { %v281_v38 = vmin.f32 %v268_v29, %v274_v26  ;;  %v282_v39 = vmin.f32 %v268_v29, %v278_v27 }
 0x118   : > { %v300_v44 = vsub.f32 %v281_v38, %v298_v36  ;;  %v301_v45 = vsub.f32 %v282_v39, %v299_v37 }
 0x11a   : > { %v302_v49 = vadd.f32 1.0, %v300_v44  ;;  %v303_v50 = vadd.f32 1.0, %v301_v45 }
 0x11c   : > { %v304_v55 = vmax.f32 %v302_v49, 0.0  ;;  %v305_v56 = vmax.f32 %v303_v50, 0.0 }
 0x11e   : > { %v306_v58 = vmul.f32 %v304_v55, %v264_v53  ;;  %v307_v59 = vmul.f32 %v305_v56, %v265_v54 }
 0x186   : > { %v326_v57 = vpop.permute.xlu1 %325 }
 0x187   : > { %v339_v60 = vadd.f32 %v332_v51, %v326_v57  ;;  %v340_v61 = vadd.f32 %v336_v52, %v326_v57 }
 0x189   : > { %v341_v62 = vsub.f32 %v339_v60, %v306_v58  ;;  %v342_v63 = vsub.f32 %v340_v61, %v307_v59 }
 0x18b   : > { %530 = vrcp.f32 %v341_v62 }
 0x18c   : > { %532 = vrcp.f32 %v342_v63 }
 0x198   : > { %v531_v4 = vpop.eup %530 }
 0x199   : > { %v533_v5 = vpop.eup %532  ;;  %v345_v6 = vmul.f32 %v531_v4, %v341_v62 }
 0x19a   : > { %v346_v8 = vmul.f32 %v533_v5, %v342_v63 }
 0x19b   : > { %v347_v10 = vsub.f32 2.0, %v345_v6 }
 0x19c   : > { %v348_v11 = vsub.f32 2.0, %v346_v8 }
 0x19d   : > { %v349_v12 = vmul.f32 %v531_v4, %v347_v10 }
 0x19e   : > { %v350_v16 = vmul.f32 %v533_v5, %v348_v11 }
 0x19f   : > { %v351_v15 = vmul.f32 %v349_v12, %v306_v58 }
 0x1a0   : > { %v352_v17 = vmul.f32 %v350_v16, %v307_v59 }
 0x1a1   : > { %v364_v18 = vsel %vm362_vm7, %v351_v15, -1.0 }
 0x1a2   : > { %v365_v19 = vsel %vm363_vm8, %v352_v17, -1.0 }
 0x1a3   : > { %v366_v3 = vmax.f32 %v364_v18, %v365_v19 }
 0x1a5   : > { %367 = vmax.xlane.f32.xlu0 %v366_v3 }
 0x22e   : > { %v368_v13 = vpop.xlane.xlu0 %367 }
 0x22f   : > { %374 = vst.msk [vmem:[%s203_s13] sm:$0xff] %vm373_vm9, %v368_v13 }
 0x230 PF: > { %s19_s19 = sadd.s32 1, %s570_s19   ;;  %s676_s17 = smov %s566_s18 }
 0x231   : > { %p16_p10 = scmp.ge.s32.totalorder %s19_s19, 4   ;;  %s677_s18 = smov %s679_s0 }
 0x233   :  { %18 = sbr.rel (!%p16_p10) target bundleno = 17 (0x11), region = 72 }

</bundles_post_ra>
